<compile_context>
chip_gen: v7x
topology: tpu7x:2x2x1
jax: 0.10.0
libtpu: 0.0.40
codegen_flags: <defaults>
</compile_context>

<pallas_src>
import jax
import jax.numpy as jnp
from jax.experimental import pallas as pl
from jax.experimental.pallas import tpu as pltpu

_LANES = 128
_SUBLANES = 8
_BLOCK_ROWS_CAP = 8192      # 8192 * 128 * 4 B = 4 MiB per output block
_FASTPATH_MAX = 64 * 1024   # below this, fused XLA one-hot beats pallas launch cost


def _ones_vector_kernel(idx_ref, out_ref):
    # idx_ref: SMEM int32 (2,) scalar-prefetch ref: [first_cam_trap, last_cam_trap]
    # out_ref: VMEM (block_rows, 128) float32 block of the flattened vector
    rows, lanes = out_ref.shape              # static block shape
    block_size = rows * lanes
    base = pl.program_id(0) * block_size     # scalar unit

    # Fold the block base into the comparison constants (scalar subtract
    # instead of a per-element VPU add).
    first = idx_ref[0] - base
    last = idx_ref[1] - base

    in_first = jnp.logical_and(first >= 0, first < block_size)
    in_last = jnp.logical_and(last >= 0, last < block_size)
    hit = jnp.logical_or(in_first, in_last)

    # Blocks that cannot contain either index: pure zero splat (~1 op/vreg),
    # keeps the kernel HBM-writeback-bound even on v7x.
    @pl.when(jnp.logical_not(hit))
    def _zero():
        out_ref[...] = jnp.zeros_like(out_ref)

    # At most two grid blocks ever take this branch.
    @pl.when(hit)
    def _scatter():
        flat = (
            jax.lax.broadcasted_iota(jnp.int32, (rows, lanes), dimension=0) * lanes
            + jax.lax.broadcasted_iota(jnp.int32, (rows, lanes), dimension=1)
        )
        vec = jnp.where(flat == first, jnp.float32(1.0), jnp.float32(0.0))
        # Applied second so it overwrites the +1 when first == last, matching
        # the sequential in-place writes of the PyTorch module.
        vec = jnp.where(flat == last, jnp.float32(-1.0), vec)
        out_ref[...] = vec


def _ones_vector_pallas(idx, row_dim):
    # Lane-dense slab: rows0 logical rows of 128 lanes.  rows0 is NOT rounded
    # up to the block size -- the last grid block may be partial and Pallas
    # masks its out-of-range writeback, so no padding rows hit HBM.
    rows0 = pl.cdiv(row_dim, _LANES)

    if rows0 <= _SUBLANES:
        # Single block whose dims equal the full array dims (allowed even when
        # rows0 is not a multiple of 8).
        block_rows = rows0
        n_blocks = 1
    else:
        # >= 2 blocks so ("parallel",) can shard across v7x's two TensorCores;
        # cap at 4 MiB so the double-buffered output fits every generation's
        # scoped-VMEM default.
        half = pl.cdiv(pl.cdiv(rows0, 2), _SUBLANES) * _SUBLANES
        block_rows = min(half, _BLOCK_ROWS_CAP)
        n_blocks = pl.cdiv(rows0, block_rows)

    slab = pl.pallas_call(
        _ones_vector_kernel,
        out_shape=jax.ShapeDtypeStruct((rows0, _LANES), jnp.float32),
        grid_spec=pltpu.PrefetchScalarGridSpec(
            num_scalar_prefetch=1,
            grid=(n_blocks,),
            in_specs=[],
            out_specs=pl.BlockSpec((block_rows, _LANES), lambda i, idx_ref: (i, 0)),
        ),
        compiler_params=pltpu.CompilerParams(
            dimension_semantics=("parallel",),
        ),
    )(idx)

    padded = rows0 * _LANES
    # Row-major reshape: slab[r, c] is element r*128 + c of the flat vector.
    out = slab.reshape(1, padded)
    if padded == row_dim:
        return out                 # zero-copy: no trailing slice at all
    # Tail pad (< 128 elements) is guaranteed zero for in-range indices.
    # TODO(synk): for huge non-128-aligned row_dim this slice is one extra HBM
    # round trip; keep row_dim a multiple of 128 (or slice inside the
    # consumer's jit) to avoid it.
    return out[:, :row_dim]


def _ones_vector_fast(idx, row_dim):
    out = jnp.zeros((1, row_dim), dtype=jnp.float32)
    out = out.at[0, idx[0]].set(1.0)
    out = out.at[0, idx[1]].set(-1.0)
    return out


def ones_vector(first_cam_trap, last_cam_trap, row_dim, *, force_pallas=False):
    """(1, row_dim) float32: +1 at `first_cam_trap`, -1 at `last_cam_trap`.

    Matches the PyTorch module's values exactly; only the dtype differs
    (float32 instead of float64), which is lossless for 0 / +1 / -1.
    Indices are assumed in-range [0, row_dim) (PyTorch-style error semantics
    for OOB / negative indices are not replicated).
    """
    idx = jnp.stack(
        [
            jnp.asarray(first_cam_trap, dtype=jnp.int32),
            jnp.asarray(last_cam_trap, dtype=jnp.int32),
        ]
    )
    if row_dim < _FASTPATH_MAX and not force_pallas:
        return _ones_vector_fast(idx, row_dim)
    return _ones_vector_pallas(idx, row_dim)


if __name__ == "__main__":
    key = jax.random.PRNGKey(0)
    k1, k2 = jax.random.split(key)

    def ref_vec(first, last, row_dim):
        return (
            jnp.zeros((1, row_dim), dtype=jnp.float32)
            .at[0, first].set(1.0)
            .at[0, last].set(-1.0)
        )

    # Pallas path, small 128-aligned size (single block, zero-copy reshape).
    row_dim = 256
    first_cam_trap = int(jax.random.randint(k1, (), 0, row_dim))
    last_cam_trap = int(jax.random.randint(k2, (), 0, row_dim))
    out = ones_vector(first_cam_trap, last_cam_trap, row_dim, force_pallas=True)
    jax.block_until_ready(out)
    assert out.shape == (1, row_dim) and out.dtype == jnp.float32
    assert bool(jnp.all(out == ref_vec(first_cam_trap, last_cam_trap, row_dim)))

    # Pallas path, multi-block grid: both indices in block 0, so block 1
    # exercises the pl.when zero-splat branch; 128-aligned -> no slice.
    out2 = ones_vector(5, 100, 4096, force_pallas=True)
    jax.block_until_ready(out2)
    assert bool(jnp.all(out2 == ref_vec(5, 100, 4096)))

    # Pallas path, indices landing in different blocks.
    out3 = ones_vector(5, 4000, 4096, force_pallas=True)
    jax.block_until_ready(out3)
    assert bool(jnp.all(out3 == ref_vec(5, 4000, 4096)))

    # first == last: the -1 must overwrite the +1 (pallas path).
    out_eq = ones_vector(7, 7, row_dim, force_pallas=True)
    jax.block_until_ready(out_eq)
    ref_eq = jnp.zeros((1, row_dim), dtype=jnp.float32).at[0, 7].set(-1.0)
    assert bool(jnp.all(out_eq == ref_eq))

    # Non-multiple-of-128 row_dim through the pallas path (pad + tail slice).
    out_odd = ones_vector(3, 299, 300, force_pallas=True)
    jax.block_until_ready(out_odd)
    assert out_odd.shape == (1, 300)
    assert bool(jnp.all(out_odd == ref_vec(3, 299, 300)))

    # Default fast path (realistic small camera-trap graph sizes).
    out_fast = ones_vector(first_cam_trap, last_cam_trap, row_dim)
    jax.block_until_ready(out_fast)
    assert bool(jnp.all(out_fast == ref_vec(first_cam_trap, last_cam_trap, row_dim)))

    print("KERNEL_OK")
</pallas_src>

<mosaic_0001>
module attributes {stable_mosaic.version = 11 : i64} {
  func.func @_ones_vector_kernel(%arg0: i32, %arg1: memref<2xi32, #tpu.memory_space<smem>>, %arg2: memref<2x128xf32, #tpu.memory_space<vmem>>) attributes {dimension_semantics = [#tpu.dimension_semantics<parallel>], iteration_bounds = array<i64: 1>, scalar_prefetch = 1 : i64, scratch_operands = 0 : i64, tpu.core_type = #tpu.core_type<tc>, window_params = [{transform_indices = @transform_0, window_bounds = array<i64: 2, 128>}]} {
    %c256_i32 = arith.constant 256 : i32
    %0 = arith.muli %arg0, %c256_i32 : i32
    %c0 = arith.constant 0 : index
    %1 = memref.load %arg1[%c0] : memref<2xi32, #tpu.memory_space<smem>>
    %2 = arith.subi %1, %0 : i32
    %c1 = arith.constant 1 : index
    %3 = memref.load %arg1[%c1] : memref<2xi32, #tpu.memory_space<smem>>
    %4 = arith.subi %3, %0 : i32
    %c0_i32 = arith.constant 0 : i32
    %5 = arith.cmpi sge, %2, %c0_i32 : i32
    %c256_i32_0 = arith.constant 256 : i32
    %6 = arith.cmpi slt, %2, %c256_i32_0 : i32
    %7 = arith.andi %5, %6 : i1
    %c0_i32_1 = arith.constant 0 : i32
    %8 = arith.cmpi sge, %4, %c0_i32_1 : i32
    %c256_i32_2 = arith.constant 256 : i32
    %9 = arith.cmpi slt, %4, %c256_i32_2 : i32
    %10 = arith.andi %8, %9 : i1
    %11 = arith.ori %7, %10 : i1
    %true = arith.constant true
    %12 = arith.xori %11, %true : i1
    %13 = arith.extui %12 : i1 to i32
    %c0_i32_3 = arith.constant 0 : i32
    %14 = arith.cmpi ne, %13, %c0_i32_3 : i32
    scf.if %14 {
      %cst = arith.constant 0.000000e+00 : f32
      %17 = vector.broadcast %cst : f32 to vector<2x128xf32>
      %c0_5 = arith.constant 0 : index
      %c0_6 = arith.constant 0 : index
      %18 = vector.load %arg2[%c0_5, %c0_6] : memref<2x128xf32, #tpu.memory_space<vmem>>, vector<2x128xf32>
      tpu.vector_store %arg2[%c0_5, %c0_6], %17 {strides = array<i32>} : memref<2x128xf32, #tpu.memory_space<vmem>>, vector<2x128xf32>,
    } else {
    }
    %15 = arith.extui %11 : i1 to i32
    %c0_i32_4 = arith.constant 0 : i32
    %16 = arith.cmpi ne, %15, %c0_i32_4 : i32
    scf.if %16 {
      %17 = tpu.iota {dimensions = array<i32: 0>} : vector<2x128xi32>
      %c128_i32 = arith.constant 128 : i32
      %18 = vector.broadcast %c128_i32 : i32 to vector<2x128xi32>
      %19 = arith.muli %17, %18 : vector<2x128xi32>
      %20 = tpu.iota {dimensions = array<i32: 1>} : vector<2x128xi32>
      %21 = arith.addi %19, %20 : vector<2x128xi32>
      %22 = vector.broadcast %2 : i32 to vector<2x128xi32>
      %23 = arith.cmpi eq, %21, %22 : vector<2x128xi32>
      %cst = arith.constant 1.000000e+00 : f32
      %cst_5 = arith.constant 0.000000e+00 : f32
      %24 = vector.broadcast %cst : f32 to vector<2x128xf32>
      %25 = vector.broadcast %cst_5 : f32 to vector<2x128xf32>
      %26 = arith.select %23, %24, %25 : vector<2x128xi1>, vector<2x128xf32>
      %27 = vector.broadcast %4 : i32 to vector<2x128xi32>
      %28 = arith.cmpi eq, %21, %27 : vector<2x128xi32>
      %cst_6 = arith.constant -1.000000e+00 : f32
      %29 = vector.broadcast %cst_6 : f32 to vector<2x128xf32>
      %30 = arith.select %28, %29, %26 : vector<2x128xi1>, vector<2x128xf32>
      %c0_7 = arith.constant 0 : index
      %c0_8 = arith.constant 0 : index
      %31 = vector.load %arg2[%c0_7, %c0_8] : memref<2x128xf32, #tpu.memory_space<vmem>>, vector<2x128xf32>
      tpu.vector_store %arg2[%c0_7, %c0_8], %30 {strides = array<i32>} : memref<2x128xf32, #tpu.memory_space<vmem>>, vector<2x128xf32>,
    } else {
    }
    return
  }
  func.func @transform_0(%arg0: i32, %arg1: memref<2xi32, #tpu.memory_space<smem>>) -> (i32, i32) {
    %c0_i32 = arith.constant 0 : i32
    %c0_i32_0 = arith.constant 0 : i32
    return %arg0, %c0_i32 : i32, i32
  }
}

</mosaic_0001>

<bundles_post_ra>
// kernel: tpu_custom_call.1
= control target key start
LH: loop header
LB: loop body
LE: loop exit
PB: predicated region body
PF: predicated region fallthrough
CT: control target
= control target key end

     0   :  { %s146_s0 = inlined_call_operand.hbm [shape: s32[2], index: 0, kind: input, shape index: {}]   ;;  %s147_s1 = inlined_call_operand.hbm [shape: f32[2,128], index: 1, kind: output, shape index: {}]  }
   0x1   :  { %s64_s8 = scalar_lea.hbm %s146_s0, 16 }
   0x2   :  { %p65_p0 = scmp.ne.s32.totalorder %s146_s0, %s64_s8  ;;  %p68_p1 = scmp.lt.u32.totalorder %s64_s8, %s146_s0 }
   0x4   :  { %p70_p2 = pnand %p68_p1, %p65_p0 }
   0x6   :  { %73 = shalt.err (!%p70_p2)  }
   0x7   :  { %s100_s13 = smov [#allocation3]  }
   0x8   :  { %7 = dma.hbm_to_smem %s146_s0, 16, %s100_s13, [#allocation2] }
   0x9   :  { %96 = dma.done.wait [#allocation2], 16 }
   0xa   :  { %97 = vsyncadd [#allocation2], 4294967280 }
   0xb   :  { %9 = sfence }
   0xc   :  { %10 = vsyncpa [#allocation5], 0  ;;  %s12_s16 = sld [smem:[#allocation3]]  ;;  %s59_s17 = sld [smem:[#allocation3 + $0x1]] }
  0x12   :  { %p16_p3 = scmp.ge.s32.totalorder %s12_s16, 0  ;;  %p17_p4 = scmp.lt.s32.totalorder %s12_s16, 256 }
  0x13   :  { %p20_p5 = scmp.ge.s32.totalorder %s59_s17, 0  ;;  %p21_p6 = scmp.lt.s32.totalorder %s59_s17, 256 }
  0x14   :  { %p18_p7 = pnand %p17_p4, %p16_p3 }
  0x15   :  { %p22_p8 = pnand %p21_p6, %p20_p5 }
  0x16   :  { %p19_p9 = pneg %p18_p7 }
  0x17   :  { %p23_p10 = pneg %p22_p8 }
  0x19   :  { %p126_p11 = por %p23_p10, %p19_p9 }
  0x1a   :  { %v28_v0 = vlaneseq (%p126_p11)  ;;  %v34_v4 = vstv (%p126_p11), %s12_s16  ;;  %v37_v5 = vstv (%p126_p11), %s59_s17  ;;  %v101_v7 = vmov (%p126_p11), 0.0  }
  0x1b   :  { %27 = sbr.rel (!%p126_p11) target bundleno = 38 (0x26), region = 5 }
  0x1c   :  { %v29_v1 = vshrl.u32 (%p126_p11), %v28_v0, 7  ;;  %v32_v2 = vand.u32 (%p126_p11), 127, %v28_v0 }
  0x1e   :  { %v30_v3 = vmul.u32 (%p126_p11), 128, %v29_v1 }
  0x20   :  { %v33_v6 = vadd.s32 (%p126_p11), %v32_v2, %v30_v3 }
  0x22   :  { %vm35_vm0 = vcmp.eq.s32.totalorder %v33_v6, %v34_v4  ;;  %vm38_vm1 = vcmp.eq.s32.totalorder %v33_v6, %v37_v5 }
  0x23   :  { %v36_v8 = vsel %vm35_vm0, 1.0, %v101_v7 }
  0x24   :  { %v39_v9 = vsel %vm38_vm1, -1.0, %v36_v8 }
  0x25   :  { %40 = vst [vmem:[#allocation4] sm:$0x3] %v39_v9 }
  0x26 PF:  { %43 = sbr.rel (%p126_p11) target bundleno = 45 (0x2d), region = 9  ;;  %v102_v10 = vmov (!%p126_p11), 0.0  }
  0x27   :  { %44 = vst [vmem:[#allocation4] sm:$0x3] (!%p126_p11), %v102_v10 }
  0x2d PF:  { %s103_s0 = smov [#allocation4]  }
  0x2e   :  { %s51_s19 = sshll.u32 %s103_s0, 4  ;;  %s52_s19 = int_to_ptr.vmem [resolvable:$true] %s51_s19 }
  0x2f   :  { %s74_s20 = scalar_lea.vmem %s52_s19, 32  ;;  %p79_p13 = scmp.lt.s32.totalorder %s52_s19, %s52_s19 }
  0x30   :  { %p75_p12 = scmp.ne.s32.totalorder %s52_s19, %s74_s20  ;;  %p80_p0 = scmp.lt.s32.totalorder %s74_s20, %s74_s20 }
  0x32   :  { %p81_p1 = por %p80_p0, %p79_p13 }
  0x34   :  { %p82_p2 = pnand %p81_p1, %p75_p12 }
  0x36   :  { %85 = shalt.err (!%p82_p2)
}
  0x37   :  { %s86_s23 = scalar_lea.hbm %s147_s1, 32 }
  0x38   :  { %p87_p3 = scmp.ne.s32.totalorder %s147_s1, %s86_s23  ;;  %p90_p4 = scmp.lt.u32.totalorder %s86_s23, %s147_s1 }
  0x3a   :  { %p92_p5 = pnand %p90_p4, %p87_p3 }
  0x3c   :  { %95 = shalt.err (!%p92_p5)
}
  0x3d   :  { %54 = dma.vmem_to_hbm [thread:$0]  %s52_s19, 32, %s147_s1, [#allocation5]  }
  0x3e   :  { %98 = dma.done.wait [#allocation5], 32  }
  0x3f   :  { %99 = vsyncadd [#allocation5], 4294967264 }
  0x40   :  { %58 = vsyncpa [#allocation5], 1 }

</bundles_post_ra>
